<compile_context>
chip_gen: v7x
topology: tpu7x:2x2x1
jax: 0.10.0
libtpu: 0.0.40
codegen_flags: <defaults>
</compile_context>

<pallas_src>
import functools

import jax
import jax.numpy as jnp
from jax.experimental import pallas as pl
from jax.experimental.pallas import tpu as pltpu


def _gconv_kernel(x_ref, w_ref, o_ref):
    """x_ref: (TB, c_in*n); w_ref: (c_in*n, c_out*n); o_ref: (TB, c_out*n)."""
    o_ref[...] = jnp.dot(
        x_ref[...], w_ref[...],
        preferred_element_type=jnp.float32).astype(o_ref.dtype)


def precompute_gconv_weight(graph_kernel, theta, Ks, c_in, c_out):
    """Fold graph kernel and theta into one (c_in*n, c_out*n) weight.

    Done once at parameter-load time, not per forward call.
    W[ci*n + u, co*n + v] = sum_k theta[ci*Ks + k, co] * graph_kernel[u, k*n + v]
    """
    n = graph_kernel.shape[0]
    assert graph_kernel.shape == (n, Ks * n)
    assert theta.shape == (Ks * c_in, c_out)
    theta_r = theta.reshape(c_in, Ks, c_out)      # [ci, k, co]
    ker_r = graph_kernel.reshape(n, Ks, n)        # [u, k, v]
    w = jnp.einsum("akc,ukv->aucv", theta_r, ker_r)   # [ci, u, co, v]
    return w.reshape(c_in * n, c_out * n)


def _round_up(x, m):
    return ((x + m - 1) // m) * m


def gconv_pallas(x, w, c_out, *, tb=128, compute_dtype=None):
    """x: (B, c_in, n); w: (c_in*n, c_out*n) precomputed; returns (B, c_out, n).

    tb: batch-tile (rows per grid step). compute_dtype=jnp.bfloat16 is the
    recommended setting on v6e/v7x (halves HBM traffic; dot still accumulates
    in f32); default keeps f32 end-to-end.
    """
    B, c_in, n = x.shape
    K = c_in * n
    N = c_out * n
    assert w.shape == (K, N), (w.shape, (K, N))

    out_dtype = x.dtype
    x_flat = x.reshape(B, K)
    if compute_dtype is not None:
        x_flat = x_flat.astype(compute_dtype)
        w = w.astype(compute_dtype)

    # Batch tiling: tb rows per grid step (multiple of 8 sublanes), pad B up.
    tb = max(8, min(tb, _round_up(B, 8)))
    b_pad = _round_up(B, tb)
    if b_pad != B:
        x_flat = jnp.pad(x_flat, ((0, b_pad - B), (0, 0)))
    grid = (b_pad // tb,)

    out_flat = pl.pallas_call(
        _gconv_kernel,
        out_shape=jax.ShapeDtypeStruct((b_pad, N), out_dtype),
        grid_spec=pltpu.PrefetchScalarGridSpec(
            num_scalar_prefetch=0,
            grid=grid,
            in_specs=[
                # (tb, K) activation tile; K is the full last dim of x_flat.
                pl.BlockSpec((tb, K), lambda i: (i, 0)),
                # W stays resident across all grid steps (same block index).
                pl.BlockSpec((K, N), lambda i: (0, 0)),
            ],
            # Lane-dense output block: last dim N = c_out*n (multiple of 128
            # for realistic STGCN sizes; 128 exactly in the demo below).
            out_specs=pl.BlockSpec((tb, N), lambda i: (i, 0)),
        ),
        compiler_params=pltpu.CompilerParams(
            dimension_semantics=("parallel",)),
    )(x_flat, w)

    # Layout plumbing back to the PyTorch output layout (B, c_out, n).
    return out_flat[:B].reshape(B, c_out, n)


def gconv_reference(x, graph_kernel, theta, Ks, c_in, c_out):
    """Line-by-line JAX mirror of the PyTorch forward (for verification)."""
    n = graph_kernel.shape[0]
    x_tmp = x.reshape(-1, n)
    x_mul = x_tmp @ graph_kernel
    x_mul = x_mul.reshape(-1, c_in, Ks, n)
    x_mul = jnp.swapaxes(x_mul, 1, 3)
    x_mul = jnp.swapaxes(x_mul, 2, 3)
    x_ker = x_mul.reshape(-1, c_in * Ks)
    x_gconv = x_ker @ theta
    x_gconv = x_gconv.reshape(-1, n, c_out)
    return jnp.swapaxes(x_gconv, 2, 1)


def xavier_uniform(key, shape, dtype=jnp.float32):
    fan_in, fan_out = shape
    bound = (6.0 / (fan_in + fan_out)) ** 0.5
    return jax.random.uniform(key, shape, dtype, minval=-bound, maxval=bound)


if __name__ == "__main__":
    # Small shapes consistent with Gconv(n_route, Ks, c_in, c_out).
    n_route, Ks, c_in, c_out = 16, 3, 4, 8
    B = 64  # batch * time slices feeding the graph conv

    key = jax.random.PRNGKey(0)
    kx, kt = jax.random.split(key)

    x = jax.random.normal(kx, (B, c_in, n_route), jnp.float32)
    graph_kernel = jnp.ones((n_route, Ks * n_route), jnp.float32)  # self.kernel
    theta = xavier_uniform(kt, (Ks * c_in, c_out))                 # self.theta

    # Weight fusion done once, outside the jitted per-call path.
    w = precompute_gconv_weight(graph_kernel, theta, Ks, c_in, c_out)
    w = jax.block_until_ready(w)

    # tb=32 -> grid of length 2 (keeps both v7x TensorCores busy; neutral on
    # single-TC v5e/v6e). On v6e/v7x also consider compute_dtype=jnp.bfloat16.
    run = jax.jit(functools.partial(gconv_pallas, c_out=c_out, tb=32))
    out = jax.block_until_ready(run(x, w))

    ref = gconv_reference(x, graph_kernel, theta, Ks, c_in, c_out)
    assert out.shape == (B, c_out, n_route), out.shape
    assert jnp.allclose(out, ref, atol=1e-3, rtol=1e-3), (
        float(jnp.max(jnp.abs(out - ref))))

    print("KERNEL_OK")
</pallas_src>

<mosaic_0001>
module attributes {stable_mosaic.version = 11 : i64} {
  func.func @_gconv_kernel(%arg0: i32, %arg1: memref<32x64xf32, #tpu.memory_space<vmem>>, %arg2: memref<64x128xf32, #tpu.memory_space<vmem>>, %arg3: memref<32x128xf32, #tpu.memory_space<vmem>>) attributes {dimension_semantics = [#tpu.dimension_semantics<parallel>], iteration_bounds = array<i64: 2>, scalar_prefetch = 0 : i64, scratch_operands = 0 : i64, tpu.core_type = #tpu.core_type<tc>, window_params = [{transform_indices = @transform_0, window_bounds = array<i64: 32, 64>}, {pipeline_mode = #tpu.pipeline_mode<synchronous>, transform_indices = @transform_1, window_bounds = array<i64: 64, 128>}, {transform_indices = @transform_2, window_bounds = array<i64: 32, 128>}]} {
    %c0 = arith.constant 0 : index
    %c0_0 = arith.constant 0 : index
    %0 = vector.load %arg1[%c0, %c0_0] : memref<32x64xf32, #tpu.memory_space<vmem>>, vector<32x64xf32>
    %c0_1 = arith.constant 0 : index
    %c0_2 = arith.constant 0 : index
    %1 = vector.load %arg2[%c0_1, %c0_2] : memref<64x128xf32, #tpu.memory_space<vmem>>, vector<64x128xf32>
    %cst = arith.constant dense<0.000000e+00> : vector<32x128xf32>
    %2 = tpu.matmul %0, %1, %cst {dimension_numbers = #tpu.dot_dimension_numbers<[1], [0], [0], [1], [0, 0, 1, 1], [], []>} : vector<32x64xf32>, vector<64x128xf32>, vector<32x128xf32> -> vector<32x128xf32>
    %c0_3 = arith.constant 0 : index
    %c0_4 = arith.constant 0 : index
    %3 = vector.load %arg3[%c0_3, %c0_4] : memref<32x128xf32, #tpu.memory_space<vmem>>, vector<32x128xf32>
    tpu.vector_store %arg3[%c0_3, %c0_4], %2 {strides = array<i32>} : memref<32x128xf32, #tpu.memory_space<vmem>>, vector<32x128xf32>,
    return
  }
  func.func @transform_0(%arg0: i32) -> (i32, i32) {
    %c0_i32 = arith.constant 0 : i32
    %c0_i32_0 = arith.constant 0 : i32
    return %arg0, %c0_i32 : i32, i32
  }
  func.func @transform_1(%arg0: i32) -> (i32, i32) {
    %c0_i32 = arith.constant 0 : i32
    %c0_i32_0 = arith.constant 0 : i32
    %c0_i32_1 = arith.constant 0 : i32
    return %c0_i32, %c0_i32_0 : i32, i32
  }
  func.func @transform_2(%arg0: i32) -> (i32, i32) {
    %c0_i32 = arith.constant 0 : i32
    %c0_i32_0 = arith.constant 0 : i32
    return %arg0, %c0_i32 : i32, i32
  }
}

</mosaic_0001>

<bundles_post_ra>
// kernel: gconv_pallas.1
= control target key start
LH: loop header
LB: loop body
LE: loop exit
PB: predicated region body
PF: predicated region fallthrough
CT: control target
= control target key end

     0   :  { %s421_s9 = smov 0   ;;  %s469_s0 = inlined_call_operand.vmem [shape: f32[64,64], index: 0, kind: input, shape index: {}]   ;;  %s470_s1 = inlined_call_operand.vmem [shape: f32[64,128], index: 1, kind: input, shape index: {}]   ;;  %s471_s2 = inlined_call_operand.vmem [shape: f32[64,128], index: 2, kind: output, shape index: {}]  }
   0x1 LB: > { %s317_s10 = sadd.s32 4294967295, %s404_s9   ;;  %p321_p0 = scmp.ge.s32.totalorder %s404_s9, 1  ;;  %s404_s9 = sphi %s421_s9, %s12_s9  }
   0x2   : > { %p113_p1 = scmp.lt.s32.totalorder %s404_s9, 3 }
   0x4   : > { %p114_p2 = pnand %p321_p0, %p113_p1 }
   0x5   : > { %v151_v0 = vld [vmem:[%s470_s1] sm:$0xff] (!%p114_p2)  ;;  %v152_v1 = vld [vmem:[%s470_s1 + $0x8] sm:$0xff] (!%p114_p2)  ;;  %v153_v2 = vld [vmem:[%s470_s1 + $0x10] sm:$0xff] (!%p114_p2)  ;;  %s322_s17 = sshll.u32 (!%p114_p2), %s317_s10, 2  ;;  %vm159_vm0 = vcmask (!%p114_p2), 523264  }
   0x6   : > { %117 = sbr.rel (%p114_p2) target bundleno = 239 (0xef), region = 28  ;;  %v366_v3 = vpack.c.bf16 (!%p114_p2), %v152_v1, %v151_v0  ;;  %v154_v4 = vld [vmem:[%s470_s1 + $0x18] sm:$0xff] (!%p114_p2)  ;;  %p136_p3 = scmp.lt.s32.totalorder (!%p114_p2), %s322_s17, 7  ;;  %v155_v6 = vld [vmem:[%s470_s1 + $0x20] sm:$0xff] (!%p114_p2)  ;;  %v156_v7 = vld [vmem:[%s470_s1 + $0x28] sm:$0xff] (!%p114_p2) }
   0x7   : > { %v370_v5 = vpack.c.bf16 (!%p114_p2), %v154_v4, %v153_v2  ;;  %v374_v8 = vpack.c.bf16 (!%p114_p2), %v156_v7, %v155_v6  ;;  %v157_v9 = vld [vmem:[%s470_s1 + $0x30] sm:$0xff] (!%p114_p2)  ;;  %v158_v10 = vld [vmem:[%s470_s1 + $0x38] sm:$0xff] (!%p114_p2) }
   0x8   : > { %367 = vmatprep.subr.bf16.mxu0 (!%p114_p2), %v366_v3  ;;  %382 = vmatprep.subr.bf16.mxu1 (!%p114_p2), %v366_v3  ;;  %v378_v13 = vpack.c.bf16 (!%p114_p2), %v158_v10, %v157_v9 }
   0x9   : > { %369 = vmatpush3.bf16.msra.mxu0 (!%p114_p2), %v366_v3  ;;  %386 = vmatpush3.bf16.msra.mxu1 (!%p114_p2), %v366_v3 }
   0xa   : > { %371 = vmatprep.subr.bf16.mxu0 (!%p114_p2), %v370_v5  ;;  %383 = vmatprep.subr.bf16.mxu1 (!%p114_p2), %v370_v5 }
   0xd   : > { %s473_s17 = smov (!%p136_p3, %s322_s17), 7  ;;  %373 = vmatpush3.bf16.msra.mxu0 %v370_v5  ;;  %387 = vmatpush3.bf16.msra.mxu1 %v370_v5 }
   0xe   : > { %s323_s24 = sshll.u32 %s473_s17, 3  ;;  %375 = vmatprep.subr.bf16.mxu0 %v374_v8  ;;  %384 = vmatprep.subr.bf16.mxu1 %v374_v8 }
   0xf   : > { %s139_s3 = scalar_lea.vmem %s469_s0, %s323_s24  ;;  %s145_s6 = scalar_lea.vmem %s471_s2, %s323_s24 }
  0x10   : > { %v147_v11 = vld [vmem:[%s139_s3] sm:$0xff]  ;;  %v149_v12 = vld [vmem:[%s139_s3 + $0x10] sm:$0xff]  ;;  %v148_v14 = vld [vmem:[%s139_s3 + $0x8] sm:$0xff] }
  0x11   : > { %360 = vmatprep.mubr.msk.f32.mxu0 %vm159_vm0, %v147_v11  ;;  %363 = vmatprep.mubr.msk.f32.mxu1 %vm159_vm0, %v149_v12  ;;  %v150_v15 = vld [vmem:[%s139_s3 + $0x18] sm:$0xff] }
  0x12   : > { %377 = vmatpush3.bf16.msra.mxu0 %v374_v8  ;;  %388 = vmatpush3.bf16.msra.mxu1 %v374_v8 }
  0x13   : > { %379 = vmatprep.subr.bf16.mxu0 %v378_v13  ;;  %385 = vmatprep.subr.bf16.mxu1 %v378_v13 }
  0x16   : > { %381 = vmatpush3.bf16.msra.mxu0 %v378_v13  ;;  %389 = vmatpush3.bf16.msra.mxu1 %v378_v13 }
  0x19   : > { %361 = vmatmul.mubr.msk.f32.vlgmr.msra.gmra.mrb[0].mxu0 %vm159_vm0, %v148_v14  ;;  %364 = vmatmul.mubr.msk.f32.vlgmr.msra.gmra.mrb[0].mxu1 %vm159_vm0, %v150_v15 }
  0xec   : > { %v362_v16 = vpop.f32.mrb[0].mxu0  ;;  %v365_v17 = vpop.f32.mrb[0].mxu1 }
  0xed   : > { %v238_v18 = vpop.f32.mrb[1].mxu0  ;;  %v248_v19 = vpop.f32.mrb[1].mxu1  ;;  %258 = vst [vmem:[%s145_s6 + $0x8] sm:$0xff] %v362_v16  ;;  %260 = vst [vmem:[%s145_s6 + $0x18] sm:$0xff] %v365_v17 }
  0xee   : > { %257 = vst [vmem:[%s145_s6] sm:$0xff] %v238_v18  ;;  %259 = vst [vmem:[%s145_s6 + $0x10] sm:$0xff] %v248_v19 }
  0xef PF: > { %s12_s9 = sadd.s32 1, %s404_s9  }
  0xf0   : > { %p9_p4 = scmp.ge.s32.totalorder %s12_s9, 4  }
  0xf2   :  { %11 = sbr.rel (!%p9_p4) target bundleno = 1 (0x1), region = 58 }

</bundles_post_ra>
